<compile_context>
chip_gen: v7x
topology: tpu7x:2x2x1
jax: 0.10.0
libtpu: 0.0.40
codegen_flags: <defaults>
</compile_context>

<pallas_src>
import functools

import jax
import jax.numpy as jnp
import numpy as np
from jax import lax
from jax.experimental import pallas as pl
from jax.experimental.pallas import tpu as pltpu

_CHUNK = 256                       # lanes per in-kernel sub-chunk (vreg bound)
_TILES = (128, 256, 512, 1024)     # candidate lane-tile sizes


def _mlp_lane_kernel(x_ref, w1_ref, b1_ref, w2_ref, b2_ref, w3_ref, b3_ref,
                     o_ref, *, use_bf16):
    # Layout: candidates in lanes, features in sublanes.
    # x_ref: (1, TM)   w1: (H, 1)  b1: (H, 1)
    # w2: (H, H)       b2: (H, 1)
    # w3: (H, 1)       b3: (1, 1)  o_ref: (1, TM)
    tm = x_ref.shape[1]                      # static lane-tile size
    chunk = min(tm, _CHUNK)
    n_chunks = tm // chunk                   # tile is a multiple of chunk

    # Weights are VMEM-resident (constant index_map); load / cast ONCE per grid
    # step, hoisted out of the sub-chunk loop.
    w1 = w1_ref[...]
    b1 = b1_ref[...]
    w2 = w2_ref[...]
    b2 = b2_ref[...]
    w3 = w3_ref[...]
    b3 = b3_ref[...]
    if use_bf16:
        w2 = w2.astype(jnp.bfloat16)

    def body(c, carry):
        start = pl.multiple_of(c * chunk, chunk)
        x = x_ref[:, pl.ds(start, chunk)]                         # (1, chunk)

        # Layer 1 (in_dim = 1): pure VPU broadcast multiply, no MXU.
        pre1 = w1 * x + b1                                        # (H, chunk)
        if use_bf16:
            h1 = jnp.tanh(pre1.astype(jnp.bfloat16))              # bf16 EUP
        else:
            h1 = jnp.tanh(pre1)

        # Layer 2 (H x H): the only real matmul -> MXU, f32 accumulation.
        pre2 = jnp.dot(w2, h1, preferred_element_type=jnp.float32) + b2
        if use_bf16:
            h2 = jnp.tanh(pre2.astype(jnp.bfloat16)).astype(jnp.float32)
        else:
            h2 = jnp.tanh(pre2)                                   # (H, chunk)

        # Layer 3 (out_dim = 1): VPU multiply + cross-sublane reduce (XLU);
        # lane-dense store into the (1, TM) output tile.
        o_ref[:, pl.ds(start, chunk)] = (
            jnp.sum(h2 * w3, axis=0, keepdims=True) + b3)
        return carry

    lax.fori_loop(0, n_chunks, body, 0, unroll=True)


def _pick_tile(n):
    for t in _TILES:
        if n <= t:
            return t
    return _TILES[-1]


@functools.partial(jax.jit, static_argnames=("tile", "use_bf16"))
def _pseudo_bo_forward_jit(x, W1, b1, W2, b2, W3, b3, *, tile, use_bf16):
    N = x.shape[0]
    H = W1.shape[0]
    n_pad = pl.cdiv(N, tile) * tile

    # Candidates-in-lanes slab, zero-padded to a tile boundary (single fused pad).
    x_lane = jnp.pad(x[:, 0].astype(jnp.float32)[None, :],
                     ((0, 0), (0, n_pad - N)))

    # Column-shaped weights/biases for the sublane(feature) x lane(candidate)
    # layout.  Torch-native (out, in) weights; only W3 is passed as a column.
    w1c = W1.reshape(H, 1).astype(jnp.float32)
    b1c = b1.reshape(H, 1).astype(jnp.float32)
    w2m = W2.astype(jnp.float32)                     # (H, H)
    b2c = b2.reshape(H, 1).astype(jnp.float32)
    w3c = W3.reshape(1, H).T.astype(jnp.float32)     # (H, 1)
    b3c = b3.reshape(1, 1).astype(jnp.float32)

    grid = (n_pad // tile,)
    lane_spec = pl.BlockSpec((1, tile), lambda i: (0, i))         # lane-dense I/O
    resident = lambda a: pl.BlockSpec(a.shape, lambda i: (0, 0))  # weights stay put

    kernel = functools.partial(_mlp_lane_kernel, use_bf16=use_bf16)

    out = pl.pallas_call(
        kernel,
        out_shape=jax.ShapeDtypeStruct((1, n_pad), jnp.float32),
        grid=grid,
        in_specs=[
            lane_spec,
            resident(w1c), resident(b1c),
            resident(w2m), resident(b2c),
            resident(w3c), resident(b3c),
        ],
        out_specs=lane_spec,
        compiler_params=pltpu.CompilerParams(dimension_semantics=("parallel",)),
    )(x_lane, w1c, b1c, w2m, b2c, w3c, b3c)

    return out[0, :N].reshape(N, 1)


def pseudo_bo_forward(x, W1, b1, W2, b2, W3, b3, *, tile=None, use_bf16=False):
    """Batched functional forward of PseudoBO's MLP in ONE jitted pallas_call.

      x : (N, 1) float32 candidates
      W1: (H, 1),  b1: (H,)
      W2: (H, H),  b2: (H,)
      W3: (1, H),  b3: (1,)
    returns (N, 1) float32, matching torch's  x @ W.T + b  per layer.
    """
    N = x.shape[0]
    if tile is None:
        tile = _pick_tile(N)
    else:
        tile = max(128, ((int(tile) + 127) // 128) * 128)   # lane divisibility
        if tile > _CHUNK:                                    # keep sub-chunking even
            tile = ((tile + _CHUNK - 1) // _CHUNK) * _CHUNK
    return _pseudo_bo_forward_jit(x, W1, b1, W2, b2, W3, b3,
                                  tile=tile, use_bf16=use_bf16)


def _init_params(key, x_dim=1, y_dim=1, h_dim=32):
    """Deterministic init mimicking torch Linear (weights in (out, in) layout)."""
    ks = jax.random.split(key, 6)

    def lin(kw, kb, fan_in, fan_out):
        bound = 1.0 / np.sqrt(fan_in)
        W = jax.random.uniform(kw, (fan_out, fan_in), jnp.float32, -bound, bound)
        b = jax.random.uniform(kb, (fan_out,), jnp.float32, -bound, bound)
        return W, b

    W1, b1 = lin(ks[0], ks[1], x_dim, h_dim)
    W2, b2 = lin(ks[2], ks[3], h_dim, h_dim)
    W3, b3 = lin(ks[4], ks[5], h_dim, y_dim)
    return W1, b1, W2, b2, W3, b3


def _reference_forward(x, W1, b1, W2, b2, W3, b3):
    # torch semantics: y = x @ W.T + b per Linear layer.
    h1 = jnp.tanh(x @ W1.T + b1)
    h2 = jnp.tanh(h1 @ W2.T + b2)
    return h2 @ W3.T + b3


if __name__ == "__main__":
    key = jax.random.PRNGKey(0)
    k_x1, k_x2, k_x3, k_p = jax.random.split(key, 4)

    params = _init_params(k_p, x_dim=1, y_dim=1, h_dim=32)

    # (a) module-sized batch (bs = 8), x in (-pi, pi) as in acquisition sampling.
    x_small = jax.random.uniform(k_x1, (8, 1), jnp.float32, -np.pi, np.pi)
    out_small = jax.block_until_ready(pseudo_bo_forward(x_small, *params))
    np.testing.assert_allclose(
        np.asarray(out_small),
        np.asarray(_reference_forward(x_small, *params)),
        rtol=1e-5, atol=1e-5,
    )

    # (b) acquisition-style batch: collapses to a SINGLE 1024-lane grid step
    #     (padding path + in-kernel sub-chunk loop exercised).
    x_big = jax.random.uniform(k_x2, (1000, 1), jnp.float32, -np.pi, np.pi)
    out_big = jax.block_until_ready(pseudo_bo_forward(x_big, *params))
    np.testing.assert_allclose(
        np.asarray(out_big),
        np.asarray(_reference_forward(x_big, *params)),
        rtol=1e-5, atol=1e-5,
    )

    # (c) large candidate sweep: multi-step "parallel" grid (3 x 1024 lanes).
    x_huge = jax.random.uniform(k_x3, (3000, 1), jnp.float32, -np.pi, np.pi)
    out_huge = jax.block_until_ready(pseudo_bo_forward(x_huge, *params))
    np.testing.assert_allclose(
        np.asarray(out_huge),
        np.asarray(_reference_forward(x_huge, *params)),
        rtol=1e-5, atol=1e-5,
    )

    # (d) bf16-activation fast path (v6e/v7x EUP/MXU optimization), loose tol.
    out_bf16 = jax.block_until_ready(
        pseudo_bo_forward(x_big, *params, use_bf16=True))
    np.testing.assert_allclose(
        np.asarray(out_bf16),
        np.asarray(_reference_forward(x_big, *params)),
        rtol=5e-2, atol=5e-2,
    )

    assert out_small.shape == (8, 1)
    assert out_big.shape == (1000, 1)
    assert out_huge.shape == (3000, 1)
    print("KERNEL_OK")
</pallas_src>

<mosaic_0001>
module attributes {stable_mosaic.version = 11 : i64} {
  func.func @_mlp_lane_kernel(%arg0: i32, %arg1: memref<1x128xf32, #tpu.memory_space<vmem>>, %arg2: memref<32x1xf32, #tpu.memory_space<vmem>>, %arg3: memref<32x1xf32, #tpu.memory_space<vmem>>, %arg4: memref<32x32xf32, #tpu.memory_space<vmem>>, %arg5: memref<32x1xf32, #tpu.memory_space<vmem>>, %arg6: memref<32x1xf32, #tpu.memory_space<vmem>>, %arg7: memref<1x1xf32, #tpu.memory_space<vmem>>, %arg8: memref<1x128xf32, #tpu.memory_space<vmem>>) attributes {dimension_semantics = [#tpu.dimension_semantics<parallel>], iteration_bounds = array<i64: 1>, scalar_prefetch = 0 : i64, scratch_operands = 0 : i64, tpu.core_type = #tpu.core_type<tc>, window_params = [{transform_indices = @transform_0, window_bounds = array<i64: 1, 128>}, {pipeline_mode = #tpu.pipeline_mode<synchronous>, transform_indices = @transform_1, window_bounds = array<i64: 32, 1>}, {pipeline_mode = #tpu.pipeline_mode<synchronous>, transform_indices = @transform_2, window_bounds = array<i64: 32, 1>}, {pipeline_mode = #tpu.pipeline_mode<synchronous>, transform_indices = @transform_3, window_bounds = array<i64: 32, 32>}, {pipeline_mode = #tpu.pipeline_mode<synchronous>, transform_indices = @transform_4, window_bounds = array<i64: 32, 1>}, {pipeline_mode = #tpu.pipeline_mode<synchronous>, transform_indices = @transform_5, window_bounds = array<i64: 32, 1>}, {pipeline_mode = #tpu.pipeline_mode<synchronous>, transform_indices = @transform_6, window_bounds = array<i64: 1, 1>}, {transform_indices = @transform_7, window_bounds = array<i64: 1, 128>}]} {
    %c0 = arith.constant 0 : index
    %c0_0 = arith.constant 0 : index
    %0 = vector.load %arg2[%c0, %c0_0] : memref<32x1xf32, #tpu.memory_space<vmem>>, vector<32x1xf32>
    %c0_1 = arith.constant 0 : index
    %c0_2 = arith.constant 0 : index
    %1 = vector.load %arg3[%c0_1, %c0_2] : memref<32x1xf32, #tpu.memory_space<vmem>>, vector<32x1xf32>
    %c0_3 = arith.constant 0 : index
    %c0_4 = arith.constant 0 : index
    %2 = vector.load %arg4[%c0_3, %c0_4] : memref<32x32xf32, #tpu.memory_space<vmem>>, vector<32x32xf32>
    %c0_5 = arith.constant 0 : index
    %c0_6 = arith.constant 0 : index
    %3 = vector.load %arg5[%c0_5, %c0_6] : memref<32x1xf32, #tpu.memory_space<vmem>>, vector<32x1xf32>
    %c0_7 = arith.constant 0 : index
    %c0_8 = arith.constant 0 : index
    %4 = vector.load %arg6[%c0_7, %c0_8] : memref<32x1xf32, #tpu.memory_space<vmem>>, vector<32x1xf32>
    %c0_9 = arith.constant 0 : index
    %c0_10 = arith.constant 0 : index
    %5 = vector.load %arg7[%c0_9, %c0_10] : memref<1x1xf32, #tpu.memory_space<vmem>>, vector<1x1xf32>
    %c0_i32 = arith.constant 0 : i32
    %c128_i32 = arith.constant 128 : i32
    %6 = arith.muli %c0_i32, %c128_i32 : i32
    %7 = tpu.assume_multiple %6, 128 : i32
    %c0_11 = arith.constant 0 : index
    %8 = arith.index_cast %7 : i32 to index
    %9 = vector.load %arg1[%c0_11, %8] : memref<1x128xf32, #tpu.memory_space<vmem>>, vector<1x128xf32>
    %10 = vector.broadcast %0 : vector<32x1xf32> to vector<32x128xf32>
    %11 = vector.broadcast %9 : vector<1x128xf32> to vector<32x128xf32>
    %12 = arith.mulf %10, %11 : vector<32x128xf32>
    %13 = vector.broadcast %1 : vector<32x1xf32> to vector<32x128xf32>
    %14 = arith.addf %12, %13 : vector<32x128xf32>
    %15 = math.tanh %14 : vector<32x128xf32>
    %cst = arith.constant dense<0.000000e+00> : vector<32x128xf32>
    %16 = tpu.matmul %2, %15, %cst {dimension_numbers = #tpu.dot_dimension_numbers<[1], [0], [0], [1], [0, 0, 1, 1], [], []>} : vector<32x32xf32>, vector<32x128xf32>, vector<32x128xf32> -> vector<32x128xf32>
    %17 = vector.broadcast %3 : vector<32x1xf32> to vector<32x128xf32>
    %18 = arith.addf %16, %17 : vector<32x128xf32>
    %19 = math.tanh %18 : vector<32x128xf32>
    %20 = vector.broadcast %4 : vector<32x1xf32> to vector<32x128xf32>
    %21 = arith.mulf %19, %20 : vector<32x128xf32>
    %cst_12 = arith.constant dense<0.000000e+00> : vector<128xf32>
    %22 = vector.multi_reduction <add>, %21, %cst_12 [0] : vector<32x128xf32> to vector<128xf32>
    %23 = vector.shape_cast %22 : vector<128xf32> to vector<1x128xf32>
    %24 = vector.broadcast %5 : vector<1x1xf32> to vector<1x128xf32>
    %25 = arith.addf %23, %24 : vector<1x128xf32>
    %c0_13 = arith.constant 0 : index
    %26 = arith.index_cast %7 : i32 to index
    %27 = vector.load %arg8[%c0_13, %26] : memref<1x128xf32, #tpu.memory_space<vmem>>, vector<1x128xf32>
    tpu.vector_store %arg8[%c0_13, %26], %25 {strides = array<i32>} : memref<1x128xf32, #tpu.memory_space<vmem>>, vector<1x128xf32>,
    %c1_i32 = arith.constant 1 : i32
    return
  }
  func.func @transform_0(%arg0: i32) -> (i32, i32) {
    %c0_i32 = arith.constant 0 : i32
    %c0_i32_0 = arith.constant 0 : i32
    return %c0_i32, %arg0 : i32, i32
  }
  func.func @transform_1(%arg0: i32) -> (i32, i32) {
    %c0_i32 = arith.constant 0 : i32
    %c0_i32_0 = arith.constant 0 : i32
    %c0_i32_1 = arith.constant 0 : i32
    return %c0_i32, %c0_i32_0 : i32, i32
  }
  func.func @transform_2(%arg0: i32) -> (i32, i32) {
    %c0_i32 = arith.constant 0 : i32
    %c0_i32_0 = arith.constant 0 : i32
    %c0_i32_1 = arith.constant 0 : i32
    return %c0_i32, %c0_i32_0 : i32, i32
  }
  func.func @transform_3(%arg0: i32) -> (i32, i32) {
    %c0_i32 = arith.constant 0 : i32
    %c0_i32_0 = arith.constant 0 : i32
    %c0_i32_1 = arith.constant 0 : i32
    return %c0_i32, %c0_i32_0 : i32, i32
  }
  func.func @transform_4(%arg0: i32) -> (i32, i32) {
    %c0_i32 = arith.constant 0 : i32
    %c0_i32_0 = arith.constant 0 : i32
    %c0_i32_1 = arith.constant 0 : i32
    return %c0_i32, %c0_i32_0 : i32, i32
  }
  func.func @transform_5(%arg0: i32) -> (i32, i32) {
    %c0_i32 = arith.constant 0 : i32
    %c0_i32_0 = arith.constant 0 : i32
    %c0_i32_1 = arith.constant 0 : i32
    return %c0_i32, %c0_i32_0 : i32, i32
  }
  func.func @transform_6(%arg0: i32) -> (i32, i32) {
    %c0_i32 = arith.constant 0 : i32
    %c0_i32_0 = arith.constant 0 : i32
    %c0_i32_1 = arith.constant 0 : i32
    return %c0_i32, %c0_i32_0 : i32, i32
  }
  func.func @transform_7(%arg0: i32) -> (i32, i32) {
    %c0_i32 = arith.constant 0 : i32
    %c0_i32_0 = arith.constant 0 : i32
    return %c0_i32, %arg0 : i32, i32
  }
}

</mosaic_0001>

<bundles_post_ra>
// kernel: _pseudo_bo_forward_jit.1
= control target key start
LH: loop header
LB: loop body
LE: loop exit
PB: predicated region body
PF: predicated region fallthrough
CT: control target
= control target key end

     0   :  { %v336_v0 = vmov 0   ;;  %vm128_vm0 = vcmask 261120   ;;  %s450_s2 = inlined_call_operand.vmem [shape: f32[32,1], index: 2, kind: input, shape index: {}]   ;;  %s451_s1 = inlined_call_operand.vmem [shape: f32[32,1], index: 1, kind: input, shape index: {}]   ;;  %s452_s6 = inlined_call_operand.<no memory space> [shape: f32[1,1], index: 6, kind: input, shape index: {}]   ;;  %s453_s4 = inlined_call_operand.vmem [shape: f32[32,1], index: 4, kind: input, shape index: {}]   ;;  %s454_s5 = inlined_call_operand.vmem [shape: f32[32,1], index: 5, kind: input, shape index: {}]   ;;  %s455_s3 = inlined_call_operand.vmem [shape: f32[32,32], index: 3, kind: input, shape index: {}]   ;;  %s456_s0 = inlined_call_operand.vmem [shape: f32[1,128], index: 0, kind: input, shape index: {}]   ;;  %s457_s7 = inlined_call_operand.vmem [shape: f32[1,128], index: 7, kind: output, shape index: {}]  }
   0x1   :  { %319 = vset.pattern.permute.xlu1 %v336_v0  ;;  %318 = vset.pattern.permute.xlu0 %v336_v0  ;;  %v32_v1 = vld [vmem:[%s450_s2] sm:$0xff]  ;;  %v12_v3 = vstv %s452_s6  ;;  %v33_v4 = vld [vmem:[%s450_s2 + $0x8] sm:$0xff]  ;;  %v31_v6 = vld [vmem:[%s451_s1 + $0x18] sm:$0xff] }
   0x2   :  { %v28_v2 = vld [vmem:[%s451_s1] sm:$0xff]  ;;  %82 = vperm.xlu1 %319, %v32_v1   ;;  %13 = vst [vmem:[#allocation2] sm:$0x1] %v12_v3  ;;  %v29_v5 = vld [vmem:[%s451_s1 + $0x8] sm:$0xff]  ;;  %v30_v7 = vld [vmem:[%s451_s1 + $0x10] sm:$0xff] }
   0x3   :  { %52 = vperm.xlu0 %318, %v28_v2   ;;  %v35_v8 = vld [vmem:[%s450_s2 + $0x18] sm:$0xff]  ;;  %v34_v9 = vld [vmem:[%s450_s2 + $0x10] sm:$0xff]  ;;  %v41_v10 = vld [vmem:[%s453_s4 + $0x8] sm:$0xff] }
   0x4   :  { %v40_v11 = vld [vmem:[%s453_s4] sm:$0xff]  ;;  %v43_v12 = vld [vmem:[%s453_s4 + $0x18] sm:$0xff]  ;;  %v42_v13 = vld [vmem:[%s453_s4 + $0x10] sm:$0xff] }
   0x5   :  { %v45_v14 = vld [vmem:[%s454_s5 + $0x8] sm:$0xff]  ;;  %v44_v15 = vld [vmem:[%s454_s5] sm:$0xff]  ;;  %v47_v16 = vld [vmem:[%s454_s5 + $0x18] sm:$0xff] }
   0x6   :  { %87 = vperm.xlu1 %319, %v33_v4   ;;  %v46_v17 = vld [vmem:[%s454_s5 + $0x10] sm:$0xff]  ;;  %v36_v19 = vld [vmem:[%s455_s3] sm:$0xff]  ;;  %v37_v44 = vld [vmem:[%s455_s3 + $0x8] sm:$0xff] }
   0x7   :  { %57 = vperm.xlu0 %318, %v29_v5   ;;  %v38_v20 = vld [vmem:[%s455_s3 + $0x10] sm:$0xff]  ;;  %299 = vmatprep.mubr.msk.f32.mxu0 %vm128_vm0, %v36_v19  ;;  %v278_v21 = vld [vmem:[%s456_s0] ss:$0 sm:$0xff]  ;;  %v39_v45 = vld [vmem:[%s455_s3 + $0x18] sm:$0xff] }
   0x8   :  { %302 = vmatprep.mubr.msk.f32.mxu1 %vm128_vm0, %v38_v20 }
   0x9   :  { %v48_v18 = vld [vmem:[#allocation2] sm:$0x1] }
   0xa   :  { %67 = vperm.xlu1 %319, %v31_v6  }
   0xb   :  { %62 = vperm.xlu0 %318, %v30_v7  }
   0xe   :  { %97 = vperm.xlu1 %319, %v35_v8   ;;  %v268_v8 = vlaneseq }
   0xf   :  { %92 = vperm.xlu0 %318, %v34_v9  }
  0x12   :  { %115 = vperm.xlu1 %319, %v41_v10  }
  0x13   :  { %110 = vperm.xlu0 %318, %v40_v11   ;;  %v269_v11 = vshrl.u32 %v268_v8, 7 }
  0x16   :  { %125 = vperm.xlu1 %319, %v43_v12  }
  0x17   :  { %120 = vperm.xlu0 %318, %v42_v13  }
  0x1a   :  { %237 = vperm.xlu1 %319, %v45_v14   ;;  %v270_v14 = vsub.s32 0, %v269_v11 }
  0x1b   :  { %232 = vperm.xlu0 %318, %v44_v15  }
  0x1e   :  { %247 = vperm.xlu1 %319, %v47_v16  }
  0x1f   :  { %242 = vperm.xlu0 %318, %v46_v17  }
  0x23   :  { %265 = vperm.xlu0 %318, %v48_v18  }
  0x81   :  { %v83_v22 = vpop.permute.xlu1 %82 }
  0x82   :  { %v53_v23 = vpop.permute.xlu0 %52 }
  0x83   :  { %v76_v24 = vmul.f32 %v278_v21, %v53_v23 }
  0x85   :  { %v100_v25 = vadd.f32 %v83_v22, %v76_v24  ;;  %v88_v26 = vpop.permute.xlu1 %87 }
  0x86   :  { %v58_v27 = vpop.permute.xlu0 %57 }
  0x87   :  { %v77_v28 = vmul.f32 %v278_v21, %v58_v27  ;;  %320 = vtanh.f32 %v100_v25 }
  0x89   :  { %v101_v29 = vadd.f32 %v88_v26, %v77_v28  ;;  %v68_v30 = vpop.permute.xlu1 %67 }
  0x8a   :  { %v63_v31 = vpop.permute.xlu0 %62  ;;  %v79_v32 = vmul.f32 %v278_v21, %v68_v30 }
  0x8b   :  { %322 = vtanh.f32 %v101_v29  ;;  %v78_v33 = vmul.f32 %v278_v21, %v63_v31 }
  0x8d   :  { %v98_v34 = vpop.permute.xlu1 %97 }
  0x8e   :  { %v93_v35 = vpop.permute.xlu0 %92  ;;  %v103_v36 = vadd.f32 %v98_v34, %v79_v32 }
  0x8f   :  { %v102_v37 = vadd.f32 %v93_v35, %v78_v33 }
  0x90   :  { %324 = vtanh.f32 %v103_v36 }
  0x91   :  { %326 = vtanh.f32 %v102_v37  ;;  %v321_v38 = vpop.eup %320  ;;  %v116_v47 = vpop.permute.xlu1 %115 }
  0x92   :  { %v111_v46 = vpop.permute.xlu0 %110 }
  0x95   :  { %v323_v39 = vpop.eup %322  ;;  %v126_v54 = vpop.permute.xlu1 %125 }
  0x96   :  { %v305_v40 = vpack.c.bf16 %v323_v39, %v321_v38  ;;  %v121_v48 = vpop.permute.xlu0 %120 }
  0x98   :  { %306 = vmatprep.subr.bf16.mxu0 %v305_v40  ;;  %313 = vmatprep.subr.bf16.mxu1 %v305_v40 }
  0x99   :  { %308 = vmatpush3.bf16.msra.mxu0 %v305_v40  ;;  %315 = vmatpush3.bf16.msra.mxu1 %v305_v40  ;;  %v238_v60 = vpop.permute.xlu1 %237 }
  0x9a   :  { %v325_v41 = vpop.eup %324  ;;  %v233_v58 = vpop.permute.xlu0 %232 }
  0x9b   :  { %v327_v42 = vpop.eup %326 }
  0x9c   :  { %v309_v43 = vpack.c.bf16 %v325_v41, %v327_v42 }
  0x9d   :  { %v248_v5 = vpop.permute.xlu1 %247 }
  0x9e   :  { %310 = vmatprep.subr.bf16.mxu0 %v309_v43  ;;  %314 = vmatprep.subr.bf16.mxu1 %v309_v43  ;;  %v243_v2 = vpop.permute.xlu0 %242 }
  0x9f   :  { %312 = vmatpush3.bf16.msra.mxu0 %v309_v43  ;;  %316 = vmatpush3.bf16.msra.mxu1 %v309_v43 }
  0xa2   :  { %300 = vmatmul.mubr.msk.f32.vlgmr.msra.gmra.mrb[0].mxu0 %vm128_vm0, %v37_v44  ;;  %303 = vmatmul.mubr.msk.f32.vlgmr.msra.gmra.mrb[0].mxu1 %vm128_vm0, %v39_v45  ;;  %v266_v16 = vpop.permute.xlu0 %265 }
  0xa3   :  { %v271_v18 = vrot.slane %v266_v16, %v270_v14 }
 0x175   :  { %v301_v49 = vpop.f32.mrb[0].mxu0  ;;  %v304_v50 = vpop.f32.mrb[0].mxu1 }
 0x176   :  { %v213_v51 = vadd.f32 %v301_v49, %v116_v47  ;;  %v207_v52 = vpop.f32.mrb[1].mxu0  ;;  %v217_v53 = vpop.f32.mrb[1].mxu1  ;;  %v223_v57 = vadd.f32 %v304_v50, %v126_v54 }
 0x177   :  { %v208_v55 = vadd.f32 %v207_v52, %v111_v46  ;;  %v218_v56 = vadd.f32 %v217_v53, %v121_v48 }
 0x178   :  { %328 = vtanh.f32 %v213_v51 }
 0x179   :  { %330 = vtanh.f32 %v208_v55 }
 0x17a   :  { %332 = vtanh.f32 %v218_v56 }
 0x17b   :  { %334 = vtanh.f32 %v223_v57 }
 0x182   :  { %v329_v59 = vpop.eup %328 }
 0x183   :  { %v251_v61 = vmul.f32 %v329_v59, %v238_v60  ;;  %v331_v62 = vpop.eup %330 }
 0x184   :  { %v333_v63 = vpop.eup %332  ;;  %v250_v0 = vmul.f32 %v331_v62, %v233_v58 }
 0x185   :  { %v335_v1 = vpop.eup %334  ;;  %v252_v4 = vmul.f32 %v333_v63, %v243_v2 }
 0x186   :  { %v254_v3 = vadd.f32 %v251_v61, %v250_v0  ;;  %v253_v6 = vmul.f32 %v335_v1, %v248_v5 }
 0x188   :  { %v255_v7 = vadd.f32 %v254_v3, %v252_v4 }
 0x18a   :  { %v256_v9 = vadd.f32 %v255_v7, %v253_v6 }
 0x18c   :  { %v257_v10 = vrot.slane %v256_v9, 4 }
 0x18e   :  { %v258_v12 = vadd.f32 %v257_v10, %v256_v9 }
 0x190   :  { %v259_v13 = vrot.slane %v258_v12, 2 }
 0x192   :  { %v260_v15 = vadd.f32 %v259_v13, %v258_v12 }
 0x194   :  { %v261_v17 = vrot.slane %v260_v15, 1 }
 0x196   :  { %v262_v19 = vadd.f32 %v261_v17, %v260_v15 }
 0x198   :  { %v272_v20 = vadd.f32 %v271_v18, %v262_v19 }
 0x19a   :  { %273 = vst [vmem:[%s457_s7] sm:$0x1] %v272_v20 }

</bundles_post_ra>
